<compile_context>
chip_gen: v6e
topology: v6e:2x2x1
jax: 0.10.0
libtpu: 0.0.40
codegen_flags: <defaults>
</compile_context>

<pallas_src>
import jax
import jax.numpy as jnp
from jax.experimental import pallas as pl
from jax.experimental.pallas import tpu as pltpu

K = 3  # 3x3 conv inside the shortcut


def shortcut_conv_kernel(xs_ref, top_ref, bot_ref, w_ref, b_ref, o_ref, acc_ref):
    # xs_ref : (1, TH, W, C)  bf16  main strip (auto-pipelined)
    # top_ref: (1, 1,  W, C)  bf16  row above the strip (clamped; zeroed at t==0)
    # bot_ref: (1, 1,  W, C)  bf16  row below the strip (clamped; zeroed at t==T-1)
    # w_ref  : (3, 3C, C)     bf16  per-dx weights, rows ordered [dy*C + ci]
    # b_ref  : (1, C)         f32   conv bias
    # o_ref  : (1, TH, W, C)        output strip
    # acc_ref: (TH, W, C)     f32   VMEM accumulator scratch
    _, TH, W, C = xs_ref.shape
    t = pl.program_id(1)
    T = pl.num_programs(1)

    strip = xs_ref[0]                                   # (TH, W, C) bf16
    zero_row = jnp.zeros((1, W, C), dtype=strip.dtype)
    top = jnp.where(t > 0, top_ref[0], zero_row)        # zero-pad at image top
    bot = jnp.where(t < T - 1, bot_ref[0], zero_row)    # zero-pad at image bottom

    # dy-stacked operand: channel blocks are [x[h-1], x[h], x[h+1]].
    # Leading-axis slices are contiguous -> no relayout; reshape below is free.
    slab_m1 = jnp.concatenate([top, strip[:TH - 1]], axis=0)   # x[h-1]
    slab_p1 = jnp.concatenate([strip[1:], bot], axis=0)        # x[h+1]
    xstack = jnp.concatenate([slab_m1, strip, slab_p1], axis=-1)   # (TH, W, 3C)
    xmat = xstack.reshape(TH * W, 3 * C)                           # free reshape

    # dx = 1 (center column): initializes acc together with residual + bias.
    y1 = jnp.dot(xmat, w_ref[1], preferred_element_type=jnp.float32)
    acc_ref[...] = (y1.reshape(TH, W, C)
                    + strip.astype(jnp.float32)          # shortcut residual
                    + b_ref[0])                          # conv bias (f32)

    # dx = 0 (left column): out[:, w] += y0[:, w-1]  (w=0 hits zero padding)
    y0 = jnp.dot(xmat, w_ref[0], preferred_element_type=jnp.float32).reshape(TH, W, C)
    acc_ref[:, 1:, :] += y0[:, :W - 1, :]

    # dx = 2 (right column): out[:, w] += y2[:, w+1] (w=W-1 hits zero padding)
    y2 = jnp.dot(xmat, w_ref[2], preferred_element_type=jnp.float32).reshape(TH, W, C)
    acc_ref[:, :W - 1, :] += y2[:, 1:, :]

    o_ref[0] = acc_ref[...].astype(o_ref.dtype)


def _pick_tile_h(H, W, C, budget_bytes=4 * 1024 * 1024):
    """Largest divisor of H whose strip working set fits a conservative budget.

    ~32 bytes/row/element covers: 2x bf16 strip (double-buffered), 2x f32 out
    (double-buffered), f32 acc scratch, bf16 3C-stacked operand and f32 matmul
    results.  4 MiB keeps us far below the scoped-VMEM defaults on v5e (16 MiB)
    and the 64 MiB physical VMEM of v7x.
    """
    per_row = max(W * C * 32, 1)
    cap = max(2, budget_bytes // per_row)
    best = H
    for d in range(2, H + 1):
        if H % d == 0 and d <= cap:
            best = d
    return best


def shortcut_block(x_nchw, weight, bias, *, tile_h=None):
    """output = x + Conv2d_3x3(x)  (padding=1, stride=1), NCHW in / NCHW out."""
    N, C, H, W = x_nchw.shape
    out_dtype = x_nchw.dtype

    # Activations in NHWC (C on lanes), bf16 for the MXU.
    x = jnp.transpose(x_nchw, (0, 2, 3, 1)).astype(jnp.bfloat16)
    # PyTorch weight (Cout, Cin, kH, kW) -> (dx, dy, Cin, Cout) -> (3, 3*Cin, Cout)
    w = jnp.transpose(weight, (3, 2, 1, 0)).reshape(K, K * C, C).astype(jnp.bfloat16)
    b = bias.reshape(1, C).astype(jnp.float32)

    TH = _pick_tile_h(H, W, C) if tile_h is None else tile_h
    assert TH >= 2 and H % TH == 0, f"tile_h={TH} must divide H={H} and be >= 2"
    T = H // TH

    out = pl.pallas_call(
        shortcut_conv_kernel,
        out_shape=jax.ShapeDtypeStruct((N, H, W, C), out_dtype),
        grid_spec=pltpu.PrefetchScalarGridSpec(
            num_scalar_prefetch=0,
            grid=(N, T),
            in_specs=[
                # main strip
                pl.BlockSpec((1, TH, W, C), lambda n, t: (n, t, 0, 0)),
                # halo row above (clamped at the top edge; zeroed in-kernel)
                pl.BlockSpec((1, 1, W, C),
                             lambda n, t: (n, jnp.maximum(t * TH - 1, 0), 0, 0)),
                # halo row below (clamped at the bottom edge; zeroed in-kernel)
                pl.BlockSpec((1, 1, W, C),
                             lambda n, t: (n, jnp.minimum((t + 1) * TH, H - 1), 0, 0)),
                # weights / bias: resident, same block every step
                pl.BlockSpec((K, K * C, C), lambda n, t: (0, 0, 0)),
                pl.BlockSpec((1, C), lambda n, t: (0, 0)),
            ],
            out_specs=pl.BlockSpec((1, TH, W, C), lambda n, t: (n, t, 0, 0)),
            scratch_shapes=[pltpu.VMEM((TH, W, C), jnp.float32)],
        ),
        compiler_params=pltpu.CompilerParams(
            dimension_semantics=("parallel", "parallel"),
            vmem_limit_bytes=32 * 1024 * 1024,
        ),
    )(x, x, x, w, b)

    return jnp.transpose(out, (0, 3, 1, 2)).astype(out_dtype)


def reference_shortcut_block(x_nchw, weight, bias):
    """Pure-JAX f32 reference: x + conv3x3(x) + b, NCHW."""
    y = jax.lax.conv_general_dilated(
        x_nchw, weight, window_strides=(1, 1), padding=((1, 1), (1, 1)),
        dimension_numbers=("NCHW", "OIHW", "NCHW"))
    return x_nchw + y + bias[None, :, None, None]


if __name__ == "__main__":
    key = jax.random.PRNGKey(0)
    kx, kw, kb = jax.random.split(key, 3)

    N, C, H, W = 2, 4, 16, 16
    x = jax.random.normal(kx, (N, C, H, W), dtype=jnp.float32)
    # Deterministic synthetic parameters for the wrapped Conv2d(C, C, 3, pad=1)
    weight = jax.random.normal(kw, (C, C, K, K), dtype=jnp.float32) * 0.1
    bias = jax.random.normal(kb, (C,), dtype=jnp.float32) * 0.1

    ref = reference_shortcut_block(x, weight, bias)

    # Multi-strip path: exercises the cross-strip halo exchange (H=16, TH=8).
    out = jax.block_until_ready(shortcut_block(x, weight, bias, tile_h=8))
    assert out.shape == (N, C, H, W)
    assert jnp.allclose(out, ref, atol=5e-2, rtol=5e-2), "mismatch vs reference (tile_h=8)"

    # Auto-tiled path: single strip for this small H (both halos zero-padded).
    out2 = jax.block_until_ready(shortcut_block(x, weight, bias))
    assert jnp.allclose(out2, ref, atol=5e-2, rtol=5e-2), "mismatch vs reference (auto tile)"

    print("KERNEL_OK")
</pallas_src>

<mosaic_0001>
module attributes {stable_mosaic.version = 11 : i64} {
  func.func @shortcut_conv_kernel(%arg0: i32, %arg1: i32, %arg2: memref<1x8x16x4xbf16, #tpu.memory_space<vmem>>, %arg3: memref<1x1x16x4xbf16, #tpu.memory_space<vmem>>, %arg4: memref<1x1x16x4xbf16, #tpu.memory_space<vmem>>, %arg5: memref<3x12x4xbf16, #tpu.memory_space<vmem>>, %arg6: memref<1x4xf32, #tpu.memory_space<vmem>>, %arg7: memref<1x8x16x4xf32, #tpu.memory_space<vmem>>, %arg8: memref<8x16x4xf32, #tpu.memory_space<vmem>>) attributes {dimension_semantics = [#tpu.dimension_semantics<parallel>, #tpu.dimension_semantics<parallel>], iteration_bounds = array<i64: 2, 2>, scalar_prefetch = 0 : i64, scratch_operands = 1 : i64, tpu.core_type = #tpu.core_type<tc>, window_params = [{transform_indices = @transform_0, window_bounds = array<i64: 1, 8, 16, 4>}, {transform_indices = @transform_1, window_bounds = array<i64: 1, 1, 16, 4>}, {transform_indices = @transform_2, window_bounds = array<i64: 1, 1, 16, 4>}, {pipeline_mode = #tpu.pipeline_mode<synchronous>, transform_indices = @transform_3, window_bounds = array<i64: 3, 12, 4>}, {pipeline_mode = #tpu.pipeline_mode<synchronous>, transform_indices = @transform_4, window_bounds = array<i64: 1, 4>}, {transform_indices = @transform_5, window_bounds = array<i64: 1, 8, 16, 4>}]} {
    %c0 = arith.constant 0 : index
    %c0_0 = arith.constant 0 : index
    %c0_1 = arith.constant 0 : index
    %c0_2 = arith.constant 0 : index
    %0 = vector.load %arg2[%c0, %c0_0, %c0_1, %c0_2] : memref<1x8x16x4xbf16, #tpu.memory_space<vmem>>, vector<1x8x16x4xbf16>
    %1 = vector.shape_cast %0 : vector<1x8x16x4xbf16> to vector<8x16x4xbf16>
    %cst = arith.constant 0.000000e+00 : bf16
    %2 = vector.broadcast %cst : bf16 to vector<1x16x4xbf16>
    %c0_i32 = arith.constant 0 : i32
    %3 = arith.cmpi sgt, %arg1, %c0_i32 : i32
    %c0_3 = arith.constant 0 : index
    %c0_4 = arith.constant 0 : index
    %c0_5 = arith.constant 0 : index
    %c0_6 = arith.constant 0 : index
    %4 = vector.load %arg3[%c0_3, %c0_4, %c0_5, %c0_6] : memref<1x1x16x4xbf16, #tpu.memory_space<vmem>>, vector<1x1x16x4xbf16>
    %5 = vector.shape_cast %4 : vector<1x1x16x4xbf16> to vector<1x16x4xbf16>
    %6 = arith.select %3, %5, %2 : vector<1x16x4xbf16>
    %c1_i32 = arith.constant 1 : i32
    %7 = arith.cmpi slt, %arg1, %c1_i32 : i32
    %c0_7 = arith.constant 0 : index
    %c0_8 = arith.constant 0 : index
    %c0_9 = arith.constant 0 : index
    %c0_10 = arith.constant 0 : index
    %8 = vector.load %arg4[%c0_7, %c0_8, %c0_9, %c0_10] : memref<1x1x16x4xbf16, #tpu.memory_space<vmem>>, vector<1x1x16x4xbf16>
    %9 = vector.shape_cast %8 : vector<1x1x16x4xbf16> to vector<1x16x4xbf16>
    %10 = arith.select %7, %9, %2 : vector<1x16x4xbf16>
    %11 = vector.extract_strided_slice %1 {offsets = [0, 0, 0], sizes = [7, 16, 4], strides = [1, 1, 1]} : vector<8x16x4xbf16> to vector<7x16x4xbf16>
    %12 = tpu.concatenate %6, %11 in 0 : vector<1x16x4xbf16>, vector<7x16x4xbf16> -> vector<8x16x4xbf16>
    %13 = vector.extract_strided_slice %1 {offsets = [1, 0, 0], sizes = [7, 16, 4], strides = [1, 1, 1]} : vector<8x16x4xbf16> to vector<7x16x4xbf16>
    %14 = tpu.concatenate %13, %10 in 0 : vector<7x16x4xbf16>, vector<1x16x4xbf16> -> vector<8x16x4xbf16>
    %15 = tpu.concatenate %12, %1, %14 in 2 : vector<8x16x4xbf16>, vector<8x16x4xbf16>, vector<8x16x4xbf16> -> vector<8x16x12xbf16>
    %16 = vector.shape_cast %15 : vector<8x16x12xbf16> to vector<128x12xbf16>
    %c1 = arith.constant 1 : index
    %c0_11 = arith.constant 0 : index
    %c0_12 = arith.constant 0 : index
    %17 = vector.load %arg5[%c1, %c0_11, %c0_12] : memref<3x12x4xbf16, #tpu.memory_space<vmem>>, vector<1x12x4xbf16>
    %18 = vector.shape_cast %17 : vector<1x12x4xbf16> to vector<12x4xbf16>
    %cst_13 = arith.constant dense<0.000000e+00> : vector<128x4xf32>
    %19 = tpu.matmul %16, %18, %cst_13 {dimension_numbers = #tpu.dot_dimension_numbers<[1], [0], [0], [1], [0, 0, 1, 1], [], []>} : vector<128x12xbf16>, vector<12x4xbf16>, vector<128x4xf32> -> vector<128x4xf32>
    %20 = vector.shape_cast %19 : vector<128x4xf32> to vector<8x16x4xf32>
    %21 = arith.extf %1 : vector<8x16x4xbf16> to vector<8x16x4xf32>
    %22 = arith.addf %20, %21 : vector<8x16x4xf32>
    %c0_14 = arith.constant 0 : index
    %c0_15 = arith.constant 0 : index
    %23 = vector.load %arg6[%c0_14, %c0_15] : memref<1x4xf32, #tpu.memory_space<vmem>>, vector<1x4xf32>
    %24 = vector.shape_cast %23 : vector<1x4xf32> to vector<4xf32>
    %25 = vector.shape_cast %24 : vector<4xf32> to vector<1x1x4xf32>
    %26 = vector.broadcast %25 : vector<1x1x4xf32> to vector<8x16x4xf32>
    %27 = arith.addf %22, %26 : vector<8x16x4xf32>
    %c0_16 = arith.constant 0 : index
    %c0_17 = arith.constant 0 : index
    %c0_18 = arith.constant 0 : index
    %28 = vector.load %arg8[%c0_16, %c0_17, %c0_18] : memref<8x16x4xf32, #tpu.memory_space<vmem>>, vector<8x16x4xf32>
    tpu.vector_store %arg8[%c0_16, %c0_17, %c0_18], %27 {strides = array<i32>} : memref<8x16x4xf32, #tpu.memory_space<vmem>>, vector<8x16x4xf32>,
    %c0_19 = arith.constant 0 : index
    %c0_20 = arith.constant 0 : index
    %c0_21 = arith.constant 0 : index
    %29 = vector.load %arg5[%c0_19, %c0_20, %c0_21] : memref<3x12x4xbf16, #tpu.memory_space<vmem>>, vector<1x12x4xbf16>
    %30 = vector.shape_cast %29 : vector<1x12x4xbf16> to vector<12x4xbf16>
    %cst_22 = arith.constant dense<0.000000e+00> : vector<128x4xf32>
    %31 = tpu.matmul %16, %30, %cst_22 {dimension_numbers = #tpu.dot_dimension_numbers<[1], [0], [0], [1], [0, 0, 1, 1], [], []>} : vector<128x12xbf16>, vector<12x4xbf16>, vector<128x4xf32> -> vector<128x4xf32>
    %32 = vector.shape_cast %31 : vector<128x4xf32> to vector<8x16x4xf32>
    %c0_23 = arith.constant 0 : index
    %c1_24 = arith.constant 1 : index
    %c0_25 = arith.constant 0 : index
    %33 = vector.load %arg8[%c0_23, %c1_24, %c0_25] : memref<8x16x4xf32, #tpu.memory_space<vmem>>, vector<8x15x4xf32>
    %34 = vector.extract_strided_slice %32 {offsets = [0, 0, 0], sizes = [8, 15, 4], strides = [1, 1, 1]} : vector<8x16x4xf32> to vector<8x15x4xf32>
    %35 = arith.addf %33, %34 : vector<8x15x4xf32>
    %c0_26 = arith.constant 0 : index
    %c1_27 = arith.constant 1 : index
    %c0_28 = arith.constant 0 : index
    %36 = vector.load %arg8[%c0_26, %c1_27, %c0_28] : memref<8x16x4xf32, #tpu.memory_space<vmem>>, vector<8x15x4xf32>
    tpu.vector_store %arg8[%c0_26, %c1_27, %c0_28], %35 {strides = array<i32>} : memref<8x16x4xf32, #tpu.memory_space<vmem>>, vector<8x15x4xf32>,
    %c2 = arith.constant 2 : index
    %c0_29 = arith.constant 0 : index
    %c0_30 = arith.constant 0 : index
    %37 = vector.load %arg5[%c2, %c0_29, %c0_30] : memref<3x12x4xbf16, #tpu.memory_space<vmem>>, vector<1x12x4xbf16>
    %38 = vector.shape_cast %37 : vector<1x12x4xbf16> to vector<12x4xbf16>
    %cst_31 = arith.constant dense<0.000000e+00> : vector<128x4xf32>
    %39 = tpu.matmul %16, %38, %cst_31 {dimension_numbers = #tpu.dot_dimension_numbers<[1], [0], [0], [1], [0, 0, 1, 1], [], []>} : vector<128x12xbf16>, vector<12x4xbf16>, vector<128x4xf32> -> vector<128x4xf32>
    %40 = vector.shape_cast %39 : vector<128x4xf32> to vector<8x16x4xf32>
    %c0_32 = arith.constant 0 : index
    %c0_33 = arith.constant 0 : index
    %c0_34 = arith.constant 0 : index
    %41 = vector.load %arg8[%c0_32, %c0_33, %c0_34] : memref<8x16x4xf32, #tpu.memory_space<vmem>>, vector<8x15x4xf32>
    %42 = vector.extract_strided_slice %40 {offsets = [0, 1, 0], sizes = [8, 15, 4], strides = [1, 1, 1]} : vector<8x16x4xf32> to vector<8x15x4xf32>
    %43 = arith.addf %41, %42 : vector<8x15x4xf32>
    %c0_35 = arith.constant 0 : index
    %c0_36 = arith.constant 0 : index
    %c0_37 = arith.constant 0 : index
    %44 = vector.load %arg8[%c0_35, %c0_36, %c0_37] : memref<8x16x4xf32, #tpu.memory_space<vmem>>, vector<8x15x4xf32>
    tpu.vector_store %arg8[%c0_35, %c0_36, %c0_37], %43 {strides = array<i32>} : memref<8x16x4xf32, #tpu.memory_space<vmem>>, vector<8x15x4xf32>,
    %c0_38 = arith.constant 0 : index
    %c0_39 = arith.constant 0 : index
    %c0_40 = arith.constant 0 : index
    %45 = vector.load %arg8[%c0_38, %c0_39, %c0_40] : memref<8x16x4xf32, #tpu.memory_space<vmem>>, vector<8x16x4xf32>
    %c0_41 = arith.constant 0 : index
    %c0_42 = arith.constant 0 : index
    %c0_43 = arith.constant 0 : index
    %c0_44 = arith.constant 0 : index
    %46 = vector.load %arg7[%c0_41, %c0_42, %c0_43, %c0_44] : memref<1x8x16x4xf32, #tpu.memory_space<vmem>>, vector<1x8x16x4xf32>
    %47 = vector.shape_cast %46 : vector<1x8x16x4xf32> to vector<8x16x4xf32>
    %48 = vector.shape_cast %45 : vector<8x16x4xf32> to vector<1x8x16x4xf32>
    tpu.vector_store %arg7[%c0_41, %c0_42, %c0_43, %c0_44], %48 {strides = array<i32>} : memref<1x8x16x4xf32, #tpu.memory_space<vmem>>, vector<1x8x16x4xf32>,
    return
  }
  func.func @transform_0(%arg0: i32, %arg1: i32) -> (i32, i32, i32, i32) {
    %c0_i32 = arith.constant 0 : i32
    %c0_i32_0 = arith.constant 0 : i32
    %c0_i32_1 = arith.constant 0 : i32
    return %arg0, %arg1, %c0_i32, %c0_i32_0 : i32, i32, i32, i32
  }
  func.func @transform_1(%arg0: i32, %arg1: i32) -> (i32, i32, i32, i32) {
    %c8_i32 = arith.constant 8 : i32
    %0 = arith.muli %arg1, %c8_i32 : i32
    %c1_i32 = arith.constant 1 : i32
    %1 = arith.subi %0, %c1_i32 : i32
    %c0_i32 = arith.constant 0 : i32
    %2 = arith.maxsi %1, %c0_i32 : i32
    %c0_i32_0 = arith.constant 0 : i32
    %c0_i32_1 = arith.constant 0 : i32
    %c0_i32_2 = arith.constant 0 : i32
    return %arg0, %2, %c0_i32_0, %c0_i32_1 : i32, i32, i32, i32
  }
  func.func @transform_2(%arg0: i32, %arg1: i32) -> (i32, i32, i32, i32) {
    %c1_i32 = arith.constant 1 : i32
    %0 = arith.addi %arg1, %c1_i32 : i32
    %c8_i32 = arith.constant 8 : i32
    %1 = arith.muli %0, %c8_i32 : i32
    %c15_i32 = arith.constant 15 : i32
    %2 = arith.minsi %1, %c15_i32 : i32
    %c0_i32 = arith.constant 0 : i32
    %c0_i32_0 = arith.constant 0 : i32
    %c0_i32_1 = arith.constant 0 : i32
    return %arg0, %2, %c0_i32, %c0_i32_0 : i32, i32, i32, i32
  }
  func.func @transform_3(%arg0: i32, %arg1: i32) -> (i32, i32, i32) {
    %c0_i32 = arith.constant 0 : i32
    %c0_i32_0 = arith.constant 0 : i32
    %c0_i32_1 = arith.constant 0 : i32
    %c0_i32_2 = arith.constant 0 : i32
    return %c0_i32, %c0_i32_0, %c0_i32_1 : i32, i32, i32
  }
  func.func @transform_4(%arg0: i32, %arg1: i32) -> (i32, i32) {
    %c0_i32 = arith.constant 0 : i32
    %c0_i32_0 = arith.constant 0 : i32
    %c0_i32_1 = arith.constant 0 : i32
    return %c0_i32, %c0_i32_0 : i32, i32
  }
  func.func @transform_5(%arg0: i32, %arg1: i32) -> (i32, i32, i32, i32) {
    %c0_i32 = arith.constant 0 : i32
    %c0_i32_0 = arith.constant 0 : i32
    %c0_i32_1 = arith.constant 0 : i32
    return %arg0, %arg1, %c0_i32, %c0_i32_0 : i32, i32, i32, i32
  }
}

</mosaic_0001>

<bundles_post_ra>
// kernel: tpu_custom_call.1
= control target key start
LH: loop header
LB: loop body
LE: loop exit
PB: predicated region body
PF: predicated region fallthrough
CT: control target
= control target key end

     0   :  { %s1597_s18 = smov 0   ;;  %s1599_s19 = smov 0   ;;  %s1923_s0 = inlined_call_operand.vmem [shape: bf16[2,16,16,4], index: 0, kind: input, shape index: {}]   ;;  %s1924_s1 = inlined_call_operand.vmem [shape: bf16[2,16,16,4], index: 1, kind: input, shape index: {}]   ;;  %s1925_s2 = inlined_call_operand.vmem [shape: bf16[2,16,16,4], index: 2, kind: input, shape index: {}]   ;;  %s1926_s3 = inlined_call_operand.vmem [shape: bf16[3,12,4], index: 3, kind: input, shape index: {}]   ;;  %s1927_s4 = inlined_call_operand.vmem [shape: f32[1,4], index: 4, kind: input, shape index: {}]   ;;  %s1928_s5 = inlined_call_operand.vmem [shape: f32[2,16,16,4], index: 5, kind: output, shape index: {}]  }
   0x1   :  { %s1601_s20 = smov 0   ;;  %s1603_s21 = smov 0  }
   0x2   :  { %s1605_s22 = smov 0  }
   0x3 LB: > { %s24_s23 = sadd.s32 1, %s1555_s20  ;;  %s27_s24 = sadd.s32 1, %s1559_s21  ;;  %s1563_s22 = sphi %s1605_s22, %s15_s22   ;;  %s1559_s21 = sphi %s1603_s21, %s1933_s21   ;;  %s1555_s20 = sphi %s1601_s20, %s1932_s20   ;;  %s1551_s19 = sphi %s1599_s19, %s1931_s19   ;;  %s1547_s18 = sphi %s1597_s18, %s1930_s18  }
   0x4   : > { %p25_p0 = scmp.ge.s32.totalorder %s24_s23, 2  ;;  %p1299_p1 = scmp.ge.s32.totalorder %s1563_s22, 1 }
   0x5   : > { %p273_p2 = scmp.lt.s32.totalorder %s1563_s22, 5 }
   0x6   : > { %s1935_s23 = smov (%p25_p0, %s24_s23), 0  ;;  %s1937_s24 = smov (!%p25_p0, %s27_s24), %s1559_s21 }
   0x7   : > { %p274_p3 = pnand %p1299_p1, %p273_p2  ;;  %p29_p4 = scmp.ge.s32.totalorder %s1937_s24, 2 }
   0x8   : > { %s1300_s25 = sshll.u32 (!%p274_p3), %s1547_s18, 3  ;;  %p338_p5 = scmp.lt.s32.totalorder (!%p274_p3), %s1551_s19, 1 }
   0x9   : > { %s1939_s24 = smov (%p29_p4, %s1937_s24), 0  ;;  %277 = sbr.rel (%p274_p3) target bundleno = 413 (0x19d), region = 40 }
   0xa   : > { %p340_p6 = scmp.lt.s32.totalorder (!%p274_p3), %s1300_s25, 15  ;;  %s1376_s6 = sadd.s32 (!%p274_p3), 8, %s1300_s25 }
   0xb   : > { %p1641_p7 = scmp.lt.s32.totalorder (!%p274_p3), %s1376_s6, 15  ;;  %p418_p8 = scmp.lt.s32.totalorder (!%p274_p3), %s1547_s18, 1 }
   0xc   : > { %s1305_s13 = sadd.s32 (!%p274_p3), 4294967295, %s1300_s25  ;;  %s1565_s14 = smov (!%p274_p3), 8  }
   0xd   : > { %s1566_s15 = smov (!%p274_p3), 4   ;;  %p350_p9 = scmp.gt.s32.totalorder (!%p274_p3), %s1305_s13, 0 }
   0xe   : > { %vm575_vm0 = vcmask 1045504   ;;  %v1514_v0 = vld [vmem:[%s1926_s3 + $0x8] sm:$0x3f]   ;;  %s1941_s19 = smov (!%p338_p5, %s1551_s19), 1  ;;  %s1943_s6 = smov (!%p1641_p7, %s1376_s6), 15  ;;  %vm508_vm2 = vcmask 31744  }
   0xf   : > { %s341_s28 = scalar_select %p340_p6, %s1300_s25, 15  ;;  %1461 = vmatprep.subr.msk.bf16.mxu1 %vm575_vm0, %v1514_v0  ;;  %v577_v1 = vsel %vm575_vm0, %v1514_v0, 0  ;;  %1460 = vmatprep.subr.msk.bf16.mxu0 %vm575_vm0, %v1514_v0  ;;  %v1515_v5 = vld [vmem:[%s1926_s3] sm:$0x3f]   ;;  %v1516_v10 = vld [vmem:[%s1926_s3 + $0x10] sm:$0x3f]  }
  0x10   : > { %s1636_s29 = sshll.u32 %s1941_s19, 5  ;;  %1459 = vmatpush3.bf16.msra.mxu1 %v577_v1  ;;  %1405 = vmatpush3.bf16.msra.mxu0 %v577_v1  ;;  %s1945_s6 = smov (!%p1641_p7, %s1943_s6), 15  ;;  %v755_v8 = vsel %vm575_vm0, %v1515_v5, 0  ;;  %v912_v15 = vsel %vm575_vm0, %v1516_v10, 0  ;;  %vm533_vm3 = vcmask 64512   ;;  %vm558_vm4 = vcmask 97280  }
  0x11   : > { %s1301_s30 = sshll.u32 %s341_s28, 1  ;;  %s1318_s25 = sshll.u32 %s1945_s6, 1  ;;  %1462 = vmatprep.subr.msk.bf16.mxu1 %vm575_vm0, %v1515_v5  ;;  %1463 = vmatprep.subr.msk.bf16.mxu0 %vm575_vm0, %v1516_v10  ;;  %v1782_v61 = vld [vmem:[%s1927_s4] ss:$0 sm:$0xff]  ;;  %vm887_vm6 = vcmask 30720   ;;  %vm1043_vm7 = vcmask 1046528  }
  0x12   : > { %s1639_s7 = sadd.s32 %s1636_s29, %s1301_s30  ;;  %s375_s26 = sadd.s32 %s1318_s25, %s1636_s29 }
  0x13   : > { %s1303_s9 = sshll.u32 %s1639_s7, 2  ;;  %s1320_s27 = sshll.u32 %s375_s26, 2 }
  0x14   : > { %s1649_s12 = scalar_lea.vmem %s1923_s0, %s1303_s9  ;;  %p1306_p10 = scmp.lt.s32.totalorder %s1305_s13, 15 }
  0x15   : > { %v1652_v2 = vld [vmem:[%s1649_s12 + $0x28] sm:$0xff]   ;;  %v1655_v3 = vld [vmem:[%s1649_s12 + $0x20] sm:$0xff]   ;;  %v1658_v4 = vld [vmem:[%s1649_s12 + $0x30] sm:$0xff]   ;;  %s421_s16 = scalar_select %p418_p8, 1, 0 }
  0x16   : > { %500 = vrot.lane.b32.xlu1 %v1652_v2, %s1565_s14  ;;  %479 = vrot.lane.b32.xlu0 %v1655_v3, %s1566_s15  ;;  %v1673_v6 = vld [vmem:[%s1649_s12 + $0x8] sm:$0xff]   ;;  %v1676_v7 = vld [vmem:[%s1649_s12] sm:$0xff]   ;;  %s1947_s13 = smov (!%p350_p9, %s1305_s13), 0  ;;  %s377_s6 = scalar_lea.vmem %s1925_s2, %s1320_s27  ;;  %v686_v58 = vunpack.c.l.bf16 %v1652_v2  ;;  %v684_v59 = vunpack.c.l.bf16 %v1655_v3  ;;  %v687_v63 = vunpack.c.h.bf16 %v1652_v2 }
  0x17   : > { %v422_v9 = vstv %s421_s16  ;;  %s1949_s13 = smov (!%p1306_p10, %s1947_s13), 15  ;;  %v1696_v11 = vld [vmem:[%s1649_s12 + $0x10] sm:$0xff]   ;;  %v1699_v12 = vld [vmem:[%s1649_s12 + $0x38] sm:$0xff]   ;;  %v419_v13 = vld [vmem:[%s377_s6] sm:$0xf]  ;;  %p410_p11 = scmp.gt.s32.totalorder %s1547_s18, 0 }
  0x18   : > { %s1311_s10 = sshll.u32 %s1949_s13, 1  ;;  %v420_v14 = vld [vmem:[%s377_s6 + $0x4] sm:$0xf]  ;;  %vm423_vm1 = vcmp.eq.s32.totalorder %v422_v9, 1  ;;  %v1713_v19 = vld [vmem:[%s1649_s12 + $0x18] sm:$0xff]  }
  0x19   : > { %s358_s11 = sadd.s32 %s1311_s10, %s1636_s29  ;;  %v424_v16 = vsel %vm423_vm1, %v419_v13, 0  ;;  %v425_v17 = vsel %vm423_vm1, %v420_v14, 0 }
  0x1a   : > { %502 = vrot.lane.b32.xlu1 %v1658_v4, %s1565_s14  ;;  %481 = vrot.lane.b32.xlu0 %v1652_v2, %s1566_s15  ;;  %v1334_v18 = vcombine.low %v424_v16, %v425_v17  ;;  %s413_s29 = scalar_select %p410_p11, 1, 0 }
  0x1b   : > { %s1313_s12 = sshll.u32 %s358_s11, 2 }
  0x1c   : > { %s360_s17 = scalar_lea.vmem %s1924_s1, %s1313_s12  ;;  %v414_v20 = vstv %s413_s29 }
  0x1d   : > { %v411_v25 = vld [vmem:[%s360_s17] sm:$0xf]  ;;  %v412_v26 = vld [vmem:[%s360_s17 + $0x4] sm:$0xf]  ;;  %vm415_vm5 = vcmp.eq.s32.totalorder %v414_v20, 1 }
  0x1e   : > { %473 = vrot.lane.b32.xlu1 %v1673_v6, %s1566_s15  ;;  %471 = vrot.lane.b32.xlu0 %v1676_v7, %s1566_s15  ;;  %v416_v30 = vsel %vm415_vm5, %v411_v25, 0  ;;  %v417_v31 = vsel %vm415_vm5, %v412_v26, 0  ;;  %v677_v26 = vunpack.c.h.bf16 %v1676_v7 }
  0x1f   : > { %v1325_v34 = vcombine.low %v416_v30, %v417_v31 }
  0x22   : > { %492 = vrot.lane.b32.xlu1 %v1673_v6, %s1565_s14  ;;  %483 = vrot.lane.b32.xlu0 %v1658_v4, %s1566_s15 }
  0x26   : > { %494 = vrot.lane.b32.xlu1 %v1696_v11, %s1565_s14  ;;  %485 = vrot.lane.b32.xlu0 %v1699_v12, %s1566_s15 }
  0x2a   : > { %506 = vrot.lane.b32.xlu1 %v1334_v18, %s1565_s14  ;;  %504 = vrot.lane.b32.xlu0 %v1699_v12, %s1565_s14 }
  0x2e   : > { %477 = vrot.lane.b32.xlu1 %v1713_v19, %s1566_s15  ;;  %475 = vrot.lane.b32.xlu0 %v1696_v11, %s1566_s15  ;;  %s1324_s15 = sshll.u32 %s1639_s7, 3 }
  0x2f   : > { %s1850_s25 = scalar_lea.vmem %s1928_s5, %s1324_s15 }
  0x32   : > { %498 = vrot.lane.b32.xlu1 %v1655_v3, %s1565_s14  ;;  %496 = vrot.lane.b32.xlu0 %v1713_v19, %s1565_s14 }
  0x88   : > { %v501_v21 = vpop.permute.xlu1 %500  ;;  %v480_v22 = vpop.permute.xlu0 %479 }
  0x89   : > { %v523_v23 = vsel %vm508_vm2, %v1713_v19, %v480_v22 }
  0x8a   : > { %v543_v24 = vsel %vm533_vm3, %v523_v23, %v501_v21  ;;  %v679_v21 = vunpack.c.h.bf16 %v1673_v6  ;;  %v690_v23 = vunpack.c.l.bf16 %v1699_v12 }
  0x8b   : > { %1414 = vmatprep.mubr.msk.bf16.mxu1 %vm558_vm4, %v543_v24 }
  0x8c   : > { %v503_v27 = vpop.permute.xlu1 %502  ;;  %v482_v28 = vpop.permute.xlu0 %481 }
  0x8d   : > { %v526_v29 = vsel %vm508_vm2, %v1655_v3, %v482_v28  ;;  %v688_v28 = vunpack.c.l.bf16 %v1658_v4 }
  0x8e   : > { %v545_v32 = vsel %vm533_vm3, %v526_v29, %v503_v27 }
  0x8f   : > { %1415 = vmatmul.mubr.msk.bf16.vlgmr.msra.gmra.mxu1 %vm558_vm4, %v545_v32 }
  0x90   : > { %v474_v33 = vpop.permute.xlu1 %473  ;;  %v472_v35 = vpop.permute.xlu0 %471  ;;  %1423 = vmatpush3.bf16.msra.mxu1 %v755_v8  ;;  %v685_v8 = vunpack.c.h.bf16 %v1655_v3  ;;  %v676_v3 = vunpack.c.l.bf16 %v1676_v7 }
  0x91   : > { %v511_v36 = vsel %vm508_vm2, %v1325_v34, %v472_v35  ;;  %v514_v40 = vsel %vm508_vm2, %v1676_v7, %v474_v33 }
  0x94   : > { %v493_v37 = vpop.permute.xlu1 %492  ;;  %v484_v38 = vpop.permute.xlu0 %483 }
  0x95   : > { %v535_v39 = vsel %vm533_vm3, %v511_v36, %v493_v37  ;;  %v529_v44 = vsel %vm508_vm2, %v1652_v2, %v484_v38  ;;  %v678_v2 = vunpack.c.l.bf16 %v1673_v6  ;;  %v689_v38 = vunpack.c.h.bf16 %v1658_v4 }
  0x96   : > { %1406 = vmatprep.mubr.msk.bf16.mxu0 %vm558_vm4, %v535_v39 }
  0x98   : > { %v495_v41 = vpop.permute.xlu1 %494  ;;  %v486_v42 = vpop.permute.xlu0 %485 }
  0x99   : > { %v537_v43 = vsel %vm533_vm3, %v514_v40, %v495_v41  ;;  %v532_v45 = vsel %vm508_vm2, %v1658_v4, %v486_v42  ;;  %v682_v42 = vunpack.c.l.bf16 %v1713_v19 }
  0x9a   : > { %1407 = vmatmul.mubr.msk.bf16.vlgmr.msra.gmra.mxu0 %vm558_vm4, %v537_v43 }
  0x9b   : > { %1441 = vmatpush3.bf16.msra.mxu0 %v912_v15 }
  0x9c   : > { %v507_v46 = vpop.permute.xlu1 %506  ;;  %v505_v47 = vpop.permute.xlu0 %504 }
  0x9d   : > { %v549_v48 = vsel %vm533_vm3, %v532_v45, %v507_v46  ;;  %v547_v49 = vsel %vm533_vm3, %v529_v44, %v505_v47  ;;  %v680_v45 = vunpack.c.l.bf16 %v1696_v11 }
  0x9e   : > { %1418 = vmatprep.mubr.msk.bf16.mxu1 %vm558_vm4, %v547_v49 }
  0x9f   : > { %1419 = vmatmul.mubr.msk.bf16.gmra.mxu1 %vm558_vm4, %v549_v48 }
  0xa0   : > { %v478_v50 = vpop.permute.xlu1 %477  ;;  %1424 = vmatprep.mubr.msk.bf16.mxu1 %vm558_vm4, %v535_v39  ;;  %v476_v51 = vpop.permute.xlu0 %475 }
  0xa1   : > { %v520_v52 = vsel %vm508_vm2, %v1696_v11, %v478_v50  ;;  %v517_v53 = vsel %vm508_vm2, %v1673_v6, %v476_v51  ;;  %v691_v6 = vunpack.c.h.bf16 %v1699_v12  ;;  %v683_v50 = vunpack.c.h.bf16 %v1713_v19 }
  0xa4   : > { %v499_v54 = vpop.permute.xlu1 %498  ;;  %v497_v55 = vpop.permute.xlu0 %496 }
  0xa5   : > { %v541_v56 = vsel %vm533_vm3, %v520_v52, %v499_v54  ;;  %v539_v57 = vsel %vm533_vm3, %v517_v53, %v497_v55 }
  0xa6   : > { %1410 = vmatprep.mubr.msk.bf16.mxu0 %vm558_vm4, %v539_v57 }
  0xa7   : > { %1411 = vmatmul.mubr.msk.bf16.gmra.mxu0 %vm558_vm4, %v541_v56  ;;  %1425 = vmatmul.mubr.msk.bf16.vlgmr.msra.gmra.mxu1 %vm558_vm4, %v537_v43 }
  0xa8   : > { %1428 = vmatprep.mubr.msk.bf16.mxu1 %vm558_vm4, %v539_v57  ;;  %1442 = vmatprep.mubr.msk.bf16.mxu0 %vm558_vm4, %v535_v39 }
  0xaf   : > { %1429 = vmatmul.mubr.msk.bf16.gmra.mxu1 %vm558_vm4, %v541_v56  ;;  %1443 = vmatmul.mubr.msk.bf16.vlgmr.msra.gmra.mxu0 %vm558_vm4, %v537_v43 }
  0xb0   : > { %1432 = vmatprep.mubr.msk.bf16.mxu1 %vm558_vm4, %v543_v24  ;;  %1446 = vmatprep.mubr.msk.bf16.mxu0 %vm558_vm4, %v539_v57  ;;  %v681_v57 = vunpack.c.h.bf16 %v1696_v11 }
  0xb7   : > { %1433 = vmatmul.mubr.msk.bf16.gmra.mxu1 %vm558_vm4, %v545_v32  ;;  %1447 = vmatmul.mubr.msk.bf16.gmra.mxu0 %vm558_vm4, %v541_v56 }
  0xb8   : > { %1436 = vmatprep.mubr.msk.bf16.mxu1 %vm558_vm4, %v547_v49  ;;  %1450 = vmatprep.mubr.msk.bf16.mxu0 %vm558_vm4, %v543_v24 }
  0xbf   : > { %1437 = vmatmul.mubr.msk.bf16.gmra.mxu1 %vm558_vm4, %v549_v48  ;;  %1451 = vmatmul.mubr.msk.bf16.gmra.mxu0 %vm558_vm4, %v545_v32 }
  0xc0   : > { %1454 = vmatprep.mubr.msk.bf16.mxu0 %vm558_vm4, %v547_v49 }
  0xc7   : > { %1455 = vmatmul.mubr.msk.bf16.gmra.mxu0 %vm558_vm4, %v549_v48 }
 0x14f   : > { %v1416_v60 = vpop.f32.mrf.mxu1 }
 0x150   : > { %v702_v62 = vadd.f32 %v1416_v60, %v686_v58 }
 0x151   : > { %v645_v0 = vpop.f32.mrf.mxu1 }
 0x152   : > { %v725_v1 = vadd.f32 %v1782_v61, %v702_v62  ;;  %v700_v5 = vadd.f32 %v684_v59, %v645_v0 }
 0x153   : > { %v1417_v9 = vpop.f32.mrf.mxu1 }
 0x154   : > { %741 = vst.msk [vmem:[#allocation2 + $0x50] sm:$0xff] %vm508_vm2, %v725_v1  ;;  %v723_v10 = vadd.f32 %v1782_v61, %v700_v5  ;;  %v703_v13 = vadd.f32 %v1417_v9, %v687_v63 }
 0x155   : > { %v648_v14 = vpop.f32.mrf.mxu1 }
 0x156   : > { %739 = vst.msk [vmem:[#allocation2 + $0x40] sm:$0xff] %vm508_vm2, %v723_v10  ;;  %v726_v15 = vadd.f32 %v1782_v61, %v703_v13  ;;  %v701_v16 = vadd.f32 %v685_v8, %v648_v14 }
 0x158   : > { %742 = vst.msk [vmem:[#allocation2 + $0x58] sm:$0xff] %vm508_vm2, %v726_v15  ;;  %v724_v17 = vadd.f32 %v1782_v61, %v701_v16 }
 0x15a   : > { %740 = vst.msk [vmem:[#allocation2 + $0x48] sm:$0xff] %vm508_vm2, %v724_v17  ;;  %v1408_v18 = vpop.f32.mrf.mxu0 }
 0x15b   : > { %v694_v20 = vadd.f32 %v1408_v18, %v678_v2 }
 0x15c   : > { %v613_v22 = vpop.f32.mrf.mxu0 }
 0x15d   : > { %v717_v24 = vadd.f32 %v1782_v61, %v694_v20  ;;  %v692_v25 = vadd.f32 %v676_v3, %v613_v22 }
 0x15e   : > { %v1409_v27 = vpop.f32.mrf.mxu0 }
 0x15f   : > { %733 = vst.msk [vmem:[#allocation2 + $0x10] sm:$0xff] %vm508_vm2, %v717_v24  ;;  %v715_v29 = vadd.f32 %v1782_v61, %v692_v25  ;;  %v695_v30 = vadd.f32 %v1409_v27, %v679_v21  ;;  %v1420_v31 = vpop.f32.mrf.mxu1 }
 0x160   : > { %v706_v32 = vadd.f32 %v1420_v31, %v690_v23  ;;  %v616_v33 = vpop.f32.mrf.mxu0 }
 0x161   : > { %731 = vst.msk [vmem:[#allocation2] sm:$0xff] %vm508_vm2, %v715_v29  ;;  %v718_v34 = vadd.f32 %v1782_v61, %v695_v30  ;;  %v693_v35 = vadd.f32 %v677_v26, %v616_v33  ;;  %v661_v36 = vpop.f32.mrf.mxu1 }
 0x162   : > { %v729_v7 = vadd.f32 %v1782_v61, %v706_v32  ;;  %v704_v37 = vadd.f32 %v688_v28, %v661_v36 }
 0x163   : > { %734 = vst.msk [vmem:[#allocation2 + $0x18] sm:$0xff] %vm508_vm2, %v718_v34  ;;  %v716_v39 = vadd.f32 %v1782_v61, %v693_v35  ;;  %v1421_v40 = vpop.f32.mrf.mxu1 }
 0x164   : > { %745 = vst.msk [vmem:[#allocation2 + $0x70] sm:$0xff] %vm508_vm2, %v729_v7  ;;  %v727_v12 = vadd.f32 %v1782_v61, %v704_v37  ;;  %v707_v41 = vadd.f32 %v1421_v40, %v691_v6 }
 0x165   : > { %732 = vst.msk [vmem:[#allocation2 + $0x8] sm:$0xff] %vm508_vm2, %v716_v39  ;;  %v664_v43 = vpop.f32.mrf.mxu1 }
 0x166   : > { %743 = vst.msk [vmem:[#allocation2 + $0x60] sm:$0xff] %vm508_vm2, %v727_v12  ;;  %v730_v44 = vadd.f32 %v1782_v61, %v707_v41  ;;  %v705_v4 = vadd.f32 %v689_v38, %v664_v43  ;;  %v864_v38 = vld [vmem:[#allocation2 + $0x51] sm:$0xff]  ;;  %v862_v43 = vld [vmem:[#allocation2 + $0x41] sm:$0xff] }
 0x167   : > { %v1412_v46 = vpop.f32.mrf.mxu0  ;;  %v1426_v47 = vpop.f32.mrf.mxu1 }
 0x168   : > { %746 = vst.msk [vmem:[#allocation2 + $0x78] sm:$0xff] %vm508_vm2, %v730_v44  ;;  %v728_v48 = vadd.f32 %v1782_v61, %v705_v4  ;;  %v698_v49 = vadd.f32 %v1412_v46, %v682_v42 }
 0x169   : > { %v629_v51 = vpop.f32.mrf.mxu0  ;;  %v791_v52 = vpop.f32.mrf.mxu1 }
 0x16a   : > { %744 = vst.msk [vmem:[#allocation2 + $0x68] sm:$0xff] %vm508_vm2, %v728_v48  ;;  %v721_v53 = vadd.f32 %v1782_v61, %v698_v49  ;;  %v856_v54 = vld [vmem:[#allocation2 + $0x11] sm:$0xff]  ;;  %v696_v55 = vadd.f32 %v680_v45, %v629_v51  ;;  %v857_v56 = vld [vmem:[#allocation2 + $0x19] sm:$0x7f] }
 0x16b   : > { %v872_v58 = vadd.f32 %v1426_v47, %v856_v54  ;;  %v1413_v59 = vpop.f32.mrf.mxu0  ;;  %v1427_v60 = vpop.f32.mrf.mxu1  ;;  %v865_v48 = vld [vmem:[#allocation2 + $0x59] sm:$0x7f] }
 0x16c   : > { %737 = vst.msk [vmem:[#allocation2 + $0x30] sm:$0xff] %vm508_vm2, %v721_v53  ;;  %v719_v62 = vadd.f32 %v1782_v61, %v696_v55  ;;  %v854_v19 = vld [vmem:[#allocation2 + $0x1] sm:$0xff]  ;;  %v699_v63 = vadd.f32 %v1413_v59, %v683_v50  ;;  %v873_v0 = vadd.f32 %v1427_v60, %v857_v56  ;;  %v855_v1 = vld [vmem:[#allocation2 + $0x9] sm:$0x7f] }
 0x16d   : > { %889 = vst.msk [vmem:[#allocation2 + $0x11] sm:$0xff] %vm508_vm2, %v872_v58  ;;  %v870_v5 = vadd.f32 %v854_v19, %v791_v52  ;;  %v632_v8 = vpop.f32.mrf.mxu0  ;;  %v794_v9 = vpop.f32.mrf.mxu1  ;;  %v863_v53 = vld [vmem:[#allocation2 + $0x49] sm:$0x7f] }
 0x16e   : > { %735 = vst.msk [vmem:[#allocation2 + $0x20] sm:$0xff] %vm508_vm2, %v719_v62  ;;  %v722_v11 = vadd.f32 %v1782_v61, %v699_v63  ;;  %v697_v10 = vadd.f32 %v681_v57, %v632_v8  ;;  %v871_v13 = vadd.f32 %v855_v1, %v794_v9 }
 0x16f   : > { %890 = vst.msk [vmem:[#allocation2 + $0x19] sm:$0x7f] %vm887_vm6, %v873_v0  ;;  %v1430_v14 = vpop.f32.mrf.mxu1  ;;  %v1444_v15 = vpop.f32.mrf.mxu0  ;;  %v868_v60 = vld [vmem:[#allocation2 + $0x71] sm:$0xff] }
 0x170   : > { %886 = vst.msk [vmem:[#allocation2 + $0x1] sm:$0xff] %vm508_vm2, %v870_v5  ;;  %738 = vst.msk [vmem:[#allocation2 + $0x38] sm:$0xff] %vm508_vm2, %v722_v11  ;;  %v720_v16 = vadd.f32 %v1782_v61, %v697_v10  ;;  %v1047_v20 = vrot.slane %v1444_v15, 1 }
 0x171   : > { %888 = vst.msk [vmem:[#allocation2 + $0x9] sm:$0x7f] %vm887_vm6, %v871_v13  ;;  %v807_v2 = vpop.f32.mrf.mxu1  ;;  %v948_v17 = vpop.f32.mrf.mxu0  ;;  %v866_v0 = vld [vmem:[#allocation2 + $0x61] sm:$0xff] }
 0x172   : > { %736 = vst.msk [vmem:[#allocation2 + $0x28] sm:$0xff] %vm508_vm2, %v720_v16  ;;  %v1044_v25 = vrot.slane %v948_v17, 1 }
 0x173   : > { %v1431_v3 = vpop.f32.mrf.mxu1  ;;  %v1445_v18 = vpop.f32.mrf.mxu0 }
 0x174   : > { %v1048_v21 = vrot.slane %v1445_v18, 1  ;;  %v1013_v26 = vld [vmem:[#allocation2 + $0x10] sm:$0xff] }
 0x175   : > { %v810_v23 = vpop.f32.mrf.mxu1  ;;  %v951_v24 = vpop.f32.mrf.mxu0 }
 0x176   : > { %v1014_v22 = vld [vmem:[#allocation2 + $0x18] sm:$0x7f]  ;;  %v1049_v27 = vsel %vm1043_vm7, %v1047_v20, %v1048_v21  ;;  %v1045_v61 = vrot.slane %v951_v24, 1 }
 0x177   : > { %v1087_v28 = vadd.f32 %v1048_v21, %v1014_v22  ;;  %v860_v29 = vld [vmem:[#allocation2 + $0x31] sm:$0xff]  ;;  %v861_v30 = vld [vmem:[#allocation2 + $0x39] sm:$0x7f]  ;;  %v1086_v31 = vadd.f32 %v1049_v27, %v1013_v26  ;;  %v1434_v33 = vpop.f32.mrf.mxu1  ;;  %v1448_v6 = vpop.f32.mrf.mxu0  ;;  %v1011_v36 = vld [vmem:[#allocation2] sm:$0xff] }
 0x178   : > { %v1012_v32 = vld [vmem:[#allocation2 + $0x8] sm:$0x7f]  ;;  %v876_v34 = vadd.f32 %v1430_v14, %v860_v29  ;;  %v877_v35 = vadd.f32 %v1431_v3, %v861_v30  ;;  %v1046_v7 = vsel %vm1043_vm7, %v1044_v25, %v1045_v61  ;;  %v880_v41 = vadd.f32 %v1434_v33, %v864_v38  ;;  %v869_v22 = vld [vmem:[#allocation2 + $0x79] sm:$0x7f] }
 0x179   : > { %1103 = vst.msk [vmem:[#allocation2 + $0x18] sm:$0x7f] %vm887_vm6, %v1087_v28  ;;  %v1085_v37 = vadd.f32 %v1045_v61, %v1012_v32  ;;  %v858_v39 = vld [vmem:[#allocation2 + $0x21] sm:$0xff]  ;;  %v859_v40 = vld [vmem:[#allocation2 + $0x29] sm:$0x7f]  ;;  %v1084_v12 = vadd.f32 %v1046_v7, %v1011_v36  ;;  %v823_v42 = vpop.f32.mrf.mxu1  ;;  %v964_v44 = vpop.f32.mrf.mxu0  ;;  %v1053_v57 = vrot.slane %v1448_v6, 1 }
 0x17a   : > { %1102 = vst.msk [vmem:[#allocation2 + $0x10] sm:$0xff] %vm508_vm2, %v1086_v31  ;;  %893 = vst.msk [vmem:[#allocation2 + $0x31] sm:$0xff] %vm508_vm2, %v876_v34  ;;  %v874_v4 = vadd.f32 %v858_v39, %v807_v2  ;;  %v875_v45 = vadd.f32 %v859_v40, %v810_v23  ;;  %v878_v46 = vadd.f32 %v862_v43, %v823_v42  ;;  %v1050_v5 = vrot.slane %v964_v44, 1  ;;  %v867_v30 = vld [vmem:[#allocation2 + $0x69] sm:$0x7f] }
 0x17b   : > { %894 = vst.msk [vmem:[#allocation2 + $0x39] sm:$0x7f] %vm887_vm6, %v877_v35  ;;  %1101 = vst.msk [vmem:[#allocation2 + $0x8] sm:$0x7f] %vm887_vm6, %v1085_v37  ;;  %v1435_v47 = vpop.f32.mrf.mxu1  ;;  %v1449_v49 = vpop.f32.mrf.mxu0 }
 0x17c   : > { %1100 = vst.msk [vmem:[#allocation2] sm:$0xff] %vm508_vm2, %v1084_v12  ;;  %897 = vst.msk [vmem:[#allocation2 + $0x51] sm:$0xff] %vm508_vm2, %v880_v41  ;;  %v881_v50 = vadd.f32 %v1435_v47, %v865_v48  ;;  %v1054_v51 = vrot.slane %v1449_v49, 1 }
 0x17d   : > { %891 = vst.msk [vmem:[#allocation2 + $0x21] sm:$0xff] %vm508_vm2, %v874_v4  ;;  %895 = vst.msk [vmem:[#allocation2 + $0x41] sm:$0xff] %vm508_vm2, %v878_v46  ;;  %v826_v52 = vpop.f32.mrf.mxu1  ;;  %v967_v54 = vpop.f32.mrf.mxu0 }
 0x17e   : > { %892 = vst.msk [vmem:[#allocation2 + $0x29] sm:$0x7f] %vm887_vm6, %v875_v45  ;;  %898 = vst.msk [vmem:[#allocation2 + $0x59] sm:$0x7f] %vm887_vm6, %v881_v50  ;;  %v879_v55 = vadd.f32 %v863_v53, %v826_v52  ;;  %v1051_v58 = vrot.slane %v967_v54, 1  ;;  %v1055_v11 = vsel %vm1043_vm7, %v1053_v57, %v1054_v51 }
 0x17f   : > { %v1438_v59 = vpop.f32.mrf.mxu1  ;;  %v1452_v62 = vpop.f32.mrf.mxu0 }
 0x180   : > { %v1119_v56 = vld [vmem:[#allocation2 + $0x18] sm:$0xff]  ;;  %896 = vst.msk [vmem:[#allocation2 + $0x49] sm:$0x7f] %vm887_vm6, %v879_v55  ;;  %v884_v63 = vadd.f32 %v1438_v59, %v868_v60  ;;  %v1052_v18 = vsel %vm1043_vm7, %v1050_v5, %v1051_v58  ;;  %v1059_v20 = vrot.slane %v1452_v62, 1 }
 0x181   : > { %v1118_v19 = vld [vmem:[#allocation2 + $0x10] sm:$0xff]  ;;  %1135 = vst.msk [vmem:[%s1850_s25 + $0x18] sm:$0xff] %vm508_vm2, %v1119_v56  ;;  %v839_v10 = vpop.f32.mrf.mxu1  ;;  %v980_v13 = vpop.f32.mrf.mxu0 }
 0x182   : > { %1134 = vst.msk [vmem:[%s1850_s25 + $0x10] sm:$0xff] %vm508_vm2, %v1118_v19  ;;  %v1117_v1 = vld [vmem:[#allocation2 + $0x8] sm:$0xff]  ;;  %v1017_v8 = vld [vmem:[#allocation2 + $0x30] sm:$0xff]  ;;  %v1018_v9 = vld [vmem:[#allocation2 + $0x38] sm:$0x7f]  ;;  %v882_v2 = vadd.f32 %v866_v0, %v839_v10  ;;  %v1056_v28 = vrot.slane %v980_v13, 1 }
 0x183   : > { %v1116_v14 = vld [vmem:[#allocation2] sm:$0xff]  ;;  %1133 = vst.msk [vmem:[%s1850_s25 + $0x8] sm:$0xff] %vm508_vm2, %v1117_v1  ;;  %v1090_v15 = vadd.f32 %v1055_v11, %v1017_v8  ;;  %v1091_v16 = vadd.f32 %v1054_v51, %v1018_v9  ;;  %901 = vst.msk [vmem:[#allocation2 + $0x71] sm:$0xff] %vm508_vm2, %v884_v63  ;;  %v1439_v21 = vpop.f32.mrf.mxu1  ;;  %v1453_v23 = vpop.f32.mrf.mxu0  ;;  %v1021_v32 = vld [vmem:[#allocation2 + $0x50] sm:$0xff] }
 0x184   : > { %1132 = vst.msk [vmem:[%s1850_s25] sm:$0xff] %vm508_vm2, %v1116_v14  ;;  %v1015_v17 = vld [vmem:[#allocation2 + $0x20] sm:$0xff]  ;;  %899 = vst.msk [vmem:[#allocation2 + $0x61] sm:$0xff] %vm508_vm2, %v882_v2  ;;  %v885_v26 = vadd.f32 %v1439_v21, %v869_v22  ;;  %v1060_v27 = vrot.slane %v1453_v23, 1 }
 0x185   : > { %v1016_v3 = vld [vmem:[#allocation2 + $0x28] sm:$0x7f]  ;;  %1106 = vst.msk [vmem:[#allocation2 + $0x30] sm:$0xff] %vm508_vm2, %v1090_v15  ;;  %v1088_v24 = vadd.f32 %v1052_v18, %v1015_v17  ;;  %v1022_v61 = vld [vmem:[#allocation2 + $0x58] sm:$0x7f]  ;;  %v842_v29 = vpop.f32.mrf.mxu1  ;;  %v983_v31 = vpop.f32.mrf.mxu0  ;;  %v1019_v38 = vld [vmem:[#allocation2 + $0x40] sm:$0xff] }
 0x186   : > { %1107 = vst.msk [vmem:[#allocation2 + $0x38] sm:$0x7f] %vm887_vm6, %v1091_v16  ;;  %v1089_v25 = vadd.f32 %v1051_v58, %v1016_v3  ;;  %902 = vst.msk [vmem:[#allocation2 + $0x79] sm:$0x7f] %vm887_vm6, %v885_v26  ;;  %v1061_v33 = vsel %vm1043_vm7, %v1059_v20, %v1060_v27  ;;  %v1095_v6 = vadd.f32 %v1060_v27, %v1022_v61  ;;  %v1057_v35 = vrot.slane %v983_v31, 1 }
 0x187   : > { %1104 = vst.msk [vmem:[#allocation2 + $0x20] sm:$0xff] %vm508_vm2, %v1088_v24  ;;  %v883_v34 = vadd.f32 %v867_v30, %v842_v29  ;;  %v1094_v36 = vadd.f32 %v1061_v33, %v1021_v32  ;;  %v1020_v7 = vld [vmem:[#allocation2 + $0x48] sm:$0x7f]  ;;  %v1456_v37 = vpop.f32.mrf.mxu0 }
 0x188   : > { %1105 = vst.msk [vmem:[#allocation2 + $0x28] sm:$0x7f] %vm887_vm6, %v1089_v25  ;;  %1111 = vst.msk [vmem:[#allocation2 + $0x58] sm:$0x7f] %vm887_vm6, %v1095_v6  ;;  %v1058_v39 = vsel %vm1043_vm7, %v1056_v28, %v1057_v35  ;;  %v1093_v40 = vadd.f32 %v1057_v35, %v1020_v7  ;;  %v1065_v4 = vrot.slane %v1456_v37, 1 }
 0x189   : > { %900 = vst.msk [vmem:[#allocation2 + $0x69] sm:$0x7f] %vm887_vm6, %v883_v34  ;;  %v1092_v12 = vadd.f32 %v1058_v39, %v1019_v38  ;;  %v996_v41 = vpop.f32.mrf.mxu0 }
 0x18a   : > { %1110 = vst.msk [vmem:[#allocation2 + $0x50] sm:$0xff] %vm508_vm2, %v1094_v36  ;;  %v1062_v50 = vrot.slane %v996_v41, 1  ;;  %v1025_v51 = vld [vmem:[#allocation2 + $0x70] sm:$0xff] }
 0x18b   : > { %1109 = vst.msk [vmem:[#allocation2 + $0x48] sm:$0x7f] %vm887_vm6, %v1093_v40  ;;  %v1457_v44 = vpop.f32.mrf.mxu0  ;;  %v1023_v59 = vld [vmem:[#allocation2 + $0x60] sm:$0xff] }
 0x18c   : > { %v1122_v42 = vld [vmem:[#allocation2 + $0x30] sm:$0xff]  ;;  %1108 = vst.msk [vmem:[#allocation2 + $0x40] sm:$0xff] %vm508_vm2, %v1092_v12  ;;  %v1066_v45 = vrot.slane %v1457_v44, 1 }
 0x18d   : > { %v1123_v43 = vld [vmem:[#allocation2 + $0x38] sm:$0xff]  ;;  %1138 = vst.msk [vmem:[%s1850_s25 + $0x30] sm:$0xff] %vm508_vm2, %v1122_v42  ;;  %v999_v49 = vpop.f32.mrf.mxu0 }
 0x18e   : > { %1139 = vst.msk [vmem:[%s1850_s25 + $0x38] sm:$0xff] %vm508_vm2, %v1123_v43  ;;  %v1120_v46 = vld [vmem:[#allocation2 + $0x20] sm:$0xff]  ;;  %v1026_v48 = vld [vmem:[#allocation2 + $0x78] sm:$0x7f]  ;;  %v1067_v52 = vsel %vm1043_vm7, %v1065_v4, %v1066_v45  ;;  %v1063_v54 = vrot.slane %v999_v49, 1 }
 0x18f   : > { %v1121_v47 = vld [vmem:[#allocation2 + $0x28] sm:$0xff]  ;;  %1136 = vst.msk [vmem:[%s1850_s25 + $0x20] sm:$0xff] %vm508_vm2, %v1120_v46  ;;  %v1099_v53 = vadd.f32 %v1066_v45, %v1026_v48  ;;  %v1127_v55 = vld [vmem:[#allocation2 + $0x58] sm:$0xff]  ;;  %v1098_v56 = vadd.f32 %v1067_v52, %v1025_v51 }
 0x190   : > { %1137 = vst.msk [vmem:[%s1850_s25 + $0x28] sm:$0xff] %vm508_vm2, %v1121_v47  ;;  %v1024_v57 = vld [vmem:[#allocation2 + $0x68] sm:$0x7f]  ;;  %1143 = vst.msk [vmem:[%s1850_s25 + $0x58] sm:$0xff] %vm508_vm2, %v1127_v55  ;;  %v1064_v60 = vsel %vm1043_vm7, %v1062_v50, %v1063_v54 }
 0x191   : > { %v1126_v58 = vld [vmem:[#allocation2 + $0x50] sm:$0xff]  ;;  %1115 = vst.msk [vmem:[#allocation2 + $0x78] sm:$0x7f] %vm887_vm6, %v1099_v53  ;;  %v1097_v62 = vadd.f32 %v1063_v54, %v1024_v57  ;;  %v1096_v63 = vadd.f32 %v1064_v60, %v1023_v59 }
 0x192   : > { %1142 = vst.msk [vmem:[%s1850_s25 + $0x50] sm:$0xff] %vm508_vm2, %v1126_v58  ;;  %v1125_v19 = vld [vmem:[#allocation2 + $0x48] sm:$0xff]  ;;  %1114 = vst.msk [vmem:[#allocation2 + $0x70] sm:$0xff] %vm508_vm2, %v1098_v56 }
 0x193   : > { %v1124_v0 = vld [vmem:[#allocation2 + $0x40] sm:$0xff]  ;;  %1141 = vst.msk [vmem:[%s1850_s25 + $0x48] sm:$0xff] %vm508_vm2, %v1125_v19  ;;  %1112 = vst.msk [vmem:[#allocation2 + $0x60] sm:$0xff] %vm508_vm2, %v1096_v63 }
 0x194   : > { %1113 = vst.msk [vmem:[#allocation2 + $0x68] sm:$0x7f] %vm887_vm6, %v1097_v62 }
 0x195   : > { %1140 = vst.msk [vmem:[%s1850_s25 + $0x40] sm:$0xff] %vm508_vm2, %v1124_v0 }
 0x198   : > { %v1131_v1 = vld [vmem:[#allocation2 + $0x78] sm:$0xff] }
 0x199   : > { %v1130_v5 = vld [vmem:[#allocation2 + $0x70] sm:$0xff]  ;;  %1147 = vst.msk [vmem:[%s1850_s25 + $0x78] sm:$0xff] %vm508_vm2, %v1131_v1 }
 0x19a   : > { %1146 = vst.msk [vmem:[%s1850_s25 + $0x70] sm:$0xff] %vm508_vm2, %v1130_v5  ;;  %v1128_v9 = vld [vmem:[#allocation2 + $0x60] sm:$0xff] }
 0x19b   : > { %v1129_v8 = vld [vmem:[#allocation2 + $0x68] sm:$0xff]  ;;  %1144 = vst.msk [vmem:[%s1850_s25 + $0x60] sm:$0xff] %vm508_vm2, %v1128_v9 }
 0x19c   : > { %1145 = vst.msk [vmem:[%s1850_s25 + $0x68] sm:$0xff] %vm508_vm2, %v1129_v8 }
 0x19d PF: > { %s15_s22 = sadd.s32 1, %s1563_s22   ;;  %s1930_s18 = smov %s1555_s20 }
 0x19e   : > { %p12_p12 = scmp.ge.s32.totalorder %s15_s22, 6   ;;  %s1931_s19 = smov %s1559_s21 }
 0x19f   : > { %s1932_s20 = smov %s1935_s23  ;;  %s1933_s21 = smov %s1939_s24 }
 0x1a0   :  { %14 = sbr.rel (!%p12_p12) target bundleno = 3 (0x3), region = 78 }

</bundles_post_ra>
